<compile_context>
chip_gen: v7x
topology: tpu7x:2x2x1
jax: 0.10.0
libtpu: 0.0.40
codegen_flags: <defaults>
</compile_context>

<pallas_src>
import functools

import jax
import jax.numpy as jnp
from jax import lax
from jax.experimental import pallas as pl
from jax.experimental.pallas import tpu as pltpu


def _vmem_limit_bytes():
    """Generation-aware VMEM budget with headroom for Mosaic-internal scratch."""
    cap = 128 * 1024 * 1024
    try:
        cap = int(getattr(pltpu.get_tpu_info(), "vmem_capacity_bytes", cap))
    except Exception:
        pass
    # v7x (64 MiB physical) -> ~48 MiB; v5e/v6e (128 MiB) -> capped at ~100 MiB.
    return min(cap * 3 // 4, 100 * 1024 * 1024)


def _conv_s2d_relu_kernel(x_ref, w_ref, b_ref, o_ref, *, tr, n_tiles):
    """One grid step == one batch image; in-kernel loop over output-row tiles.

    x_ref: (1, R, Wc, Kc)   space-to-depth input (R = Ho+1, Wc = Wo+1, Kc = s*s*Cin)
    w_ref: (4, Kc, Cp)      per-offset weight slabs (grid-invariant -> DMA'd once)
    b_ref: (1, Cp)          f32 bias, zero-padded to lane width
    o_ref: (1, Ho, Wo, Cp)  NHWC f32 output, Cout padded to Cp (multiple of 128)
    """
    Ho, Wo, Cp = o_ref.shape[1], o_ref.shape[2], o_ref.shape[3]
    Kc = x_ref.shape[3]
    m = tr * Wo  # matmul M dimension (row-batched)

    # Hoisted bias broadcast: JAX does not CSE broadcast_in_dim, so do it once,
    # and initialize the accumulator from it instead of zeros + later add.
    bias = jnp.broadcast_to(b_ref[...], (m, Cp)).astype(jnp.float32)

    def row_tile(rt):
        # Clamp the start row so a ragged last tile recomputes a few rows (writing the
        # same values) instead of needing a dynamic-length slice.
        if isinstance(rt, int):
            r0 = min(rt * tr, Ho - tr)
        else:
            r0 = jnp.minimum(rt * tr, Ho - tr)
        acc = bias
        for dh in range(2):                       # 2x2 spatial offsets == all 9 conv taps
            # dh shift is a slice along a non-minor dim -> whole (Wc, Kc) slabs, no relayout.
            rows = x_ref[0, pl.ds(r0 + dh, tr)]   # (tr, Wc, Kc)
            for dw in range(2):
                # Row-batched matmul: M = tr*Wo instead of per-row (Wo, Kc) dots.
                # The dw=1 column slice is the only misaligned copy, 2x per row tile.
                xt = rows[:, dw:dw + Wo, :].reshape(m, Kc)
                acc = acc + jnp.dot(xt, w_ref[dh * 2 + dw],
                                    preferred_element_type=jnp.float32)
        out = jnp.maximum(acc, 0.0).reshape(tr, Wo, Cp).astype(o_ref.dtype)
        o_ref[0, pl.ds(r0, tr)] = out             # lane-dense (tr, Wo, 128k) store

    if n_tiles == 1:
        row_tile(0)                               # fully static indexing for small images
    else:
        # Bounded code size / live ranges at large Ho (no static Ho unroll).
        lax.fori_loop(0, n_tiles, lambda i, c: (row_tile(i), c)[1], 0)


def light_conv_forward(x, weight, bias, *, k=3, s=2, p=1,
                       operand_dtype=jnp.bfloat16, nchw_output=True):
    """relu(conv2d(x, weight, bias, stride=s, padding=p)) == LightConv.forward (bn=False).

    x: (N, Cin, H, W) NCHW; weight: (Cout, Cin, k, k); bias: (Cout,).
    Specialized to the LightConv defaults k=3, s=2 (any p >= 0, any N/H/W/Cin/Cout).
    operand_dtype=jnp.bfloat16 (default): bf16 x/w with f32 accumulation.  None -> f32.
    """
    N, Cin, H, W = x.shape
    Cout = weight.shape[0]
    assert weight.shape == (Cout, Cin, k, k)
    assert (k, s) == (3, 2), "kernel specialized to LightConv defaults k=3, s=2"

    Ho = (H + 2 * p - k) // s + 1
    Wo = (W + 2 * p - k) // s + 1
    n_off = -(-k // s)                      # spatial offsets per dim after space-to-depth (=2)
    R, Wc = Ho + n_off - 1, Wo + n_off - 1  # phase-image extents (+1 halo row/col)
    Kc = s * s * Cin                        # contraction dim: stride phases folded into channels
    Cp = ((Cout + 127) // 128) * 128        # lane-dense output channels
    # TODO(synk): for Cout <= ~32, flip the matmul orientation (Cout on sublanes, Wo on
    # lanes) so the output pads to 8 instead of 128 and is already NCHW.

    # Row tile: batch TR output rows per matmul so M = TR*Wo ~ 256 (MXU-sized).
    TR = max(1, min(Ho, -(-256 // Wo)))
    n_tiles = -(-Ho // TR)

    # ---- wrapper-side data movement: ONE fused pad + space-to-depth transpose (1x data) ----
    # TODO(synk): accept NHWC input / fuse this into the producer (or do it as in-kernel
    # strided DMA) to save one input-sized HBM round trip.
    Hp, Wp = s * R, s * Wc
    xp = jnp.pad(x, ((0, 0), (0, 0), (p, Hp - p - H), (p, Wp - p - W)))
    xs2d = (xp.reshape(N, Cin, R, s, Wc, s)
              .transpose(0, 2, 4, 3, 5, 1)          # (N, R, Wc, ph, pw, Cin)
              .reshape(N, R, Wc, Kc))               # channel index = (ph*s + pw)*Cin + c

    # ---- fold the 3x3 taps into 4 offset-weight slabs over the s2d channels ----
    # TODO(synk): for large Cin, drop the structurally-zero K rows (per-offset K of
    # 4/2/2/1 * Cin instead of uniform 4*Cin) to cut ~44% of the K work and weight VMEM.
    w_off = jnp.zeros((n_off * n_off, Kc, Cp), dtype=jnp.float32)
    for dh in range(n_off):
        for dw in range(n_off):
            t = dh * n_off + dw
            for ph in range(s):
                for pw in range(s):
                    kh, kw = s * dh + ph, s * dw + pw
                    if kh < k and kw < k:
                        q = ph * s + pw
                        w_off = w_off.at[t, q * Cin:(q + 1) * Cin, :Cout].set(
                            weight[:, :, kh, kw].T.astype(jnp.float32))
    b_row = jnp.zeros((1, Cp), dtype=jnp.float32).at[0, :Cout].set(bias.astype(jnp.float32))

    if operand_dtype is not None:   # bf16 default: native MXU rate + half the input DMA bytes
        xs2d = xs2d.astype(operand_dtype)
        w_off = w_off.astype(operand_dtype)

    kernel = functools.partial(_conv_s2d_relu_kernel, tr=TR, n_tiles=n_tiles)

    flops = 2 * N * Ho * Wo * Cin * k * k * Cout
    bytes_accessed = (xs2d.size * xs2d.dtype.itemsize
                      + w_off.size * w_off.dtype.itemsize
                      + b_row.size * b_row.dtype.itemsize
                      + N * Ho * Wo * Cp * 4)

    out_nhwc = pl.pallas_call(
        kernel,
        out_shape=jax.ShapeDtypeStruct((N, Ho, Wo, Cp), jnp.float32),
        grid_spec=pltpu.PrefetchScalarGridSpec(
            num_scalar_prefetch=0,
            grid=(N,),                                   # one image per step; rows tiled in-kernel
            in_specs=[
                pl.BlockSpec((1, R, Wc, Kc), lambda n: (n, 0, 0, 0)),
                # weight/bias block indices never change -> fetched once, stay VMEM-resident.
                # TODO(synk): pipeline_mode=pl.Buffered(1) would also drop their second
                # VMEM buffer; omitted for portability across Pallas versions.
                pl.BlockSpec((n_off * n_off, Kc, Cp), lambda n: (0, 0, 0)),
                pl.BlockSpec((1, Cp), lambda n: (0, 0)),
            ],
            out_specs=pl.BlockSpec((1, Ho, Wo, Cp), lambda n: (n, 0, 0, 0)),
        ),
        compiler_params=pltpu.CompilerParams(
            dimension_semantics=("parallel",),           # batch axis shards across v7x's 2 TCs
            vmem_limit_bytes=_vmem_limit_bytes(),        # generation-aware budget
        ),
        cost_estimate=pl.CostEstimate(
            flops=flops, transcendentals=0, bytes_accessed=bytes_accessed),
    )(xs2d, w_off, b_row)
    # TODO(synk): for very large images (e.g. Cin=128, H=W=224) the whole-image block may
    # not fit v7x's VMEM; switch to a manual-DMA row-tile pipeline (emit_pipeline) there.

    if not nchw_output:
        return out_nhwc[..., :Cout]
    # TODO(synk): return NHWC (keeping the padded lanes) directly when the consumer accepts
    # it; this slice + transpose exists only to match PyTorch's NCHW output contract.
    return out_nhwc[..., :Cout].transpose(0, 3, 1, 2)


if __name__ == "__main__":
    key = jax.random.PRNGKey(0)
    k_x, k_w, k_b = jax.random.split(key, 3)

    N, Cin, H, W = 2, 4, 16, 16
    Cout, k, s, p = 8, 3, 2, 1

    x = jax.random.normal(k_x, (N, Cin, H, W), dtype=jnp.float32)

    # deterministic parameter init (PyTorch Conv2d default uniform(-1/sqrt(fan_in), ...))
    fan_in = Cin * k * k
    bound = 1.0 / (fan_in ** 0.5)
    weight = jax.random.uniform(k_w, (Cout, Cin, k, k), jnp.float32, -bound, bound)
    bias = jax.random.uniform(k_b, (Cout,), jnp.float32, -bound, bound)

    # reference: XLA conv (same semantics as nn.Conv2d + ReLU)
    ref = lax.conv_general_dilated(
        x, weight, window_strides=(s, s), padding=((p, p), (p, p)),
        dimension_numbers=("NCHW", "OIHW", "NCHW"))
    ref = jnp.maximum(ref + bias.reshape(1, Cout, 1, 1), 0.0)

    Ho = (H + 2 * p - k) // s + 1

    # exact path (f32 operands): tight tolerance
    out_f32 = jax.block_until_ready(
        light_conv_forward(x, weight, bias, k=k, s=s, p=p, operand_dtype=None))
    assert out_f32.shape == (N, Cout, Ho, Ho)
    assert jnp.allclose(out_f32, ref, atol=1e-4, rtol=1e-4)

    # default fast path (bf16 operands, f32 accumulation): loosened tolerance
    out_bf16 = jax.block_until_ready(light_conv_forward(x, weight, bias, k=k, s=s, p=p))
    assert out_bf16.shape == (N, Cout, Ho, Ho)
    assert jnp.allclose(out_bf16, ref, atol=5e-2, rtol=5e-2)

    print("KERNEL_OK")
</pallas_src>

<mosaic_0001>
module attributes {stable_mosaic.version = 11 : i64} {
  func.func @_conv_s2d_relu_kernel(%arg0: i32, %arg1: memref<1x9x9x16xf32, #tpu.memory_space<vmem>>, %arg2: memref<4x16x128xf32, #tpu.memory_space<vmem>>, %arg3: memref<1x128xf32, #tpu.memory_space<vmem>>, %arg4: memref<1x8x8x128xf32, #tpu.memory_space<vmem>>) attributes {dimension_semantics = [#tpu.dimension_semantics<parallel>], iteration_bounds = array<i64: 2>, scalar_prefetch = 0 : i64, scratch_operands = 0 : i64, tpu.core_type = #tpu.core_type<tc>, window_params = [{transform_indices = @transform_0, window_bounds = array<i64: 1, 9, 9, 16>}, {pipeline_mode = #tpu.pipeline_mode<synchronous>, transform_indices = @transform_1, window_bounds = array<i64: 4, 16, 128>}, {pipeline_mode = #tpu.pipeline_mode<synchronous>, transform_indices = @transform_2, window_bounds = array<i64: 1, 128>}, {transform_indices = @transform_3, window_bounds = array<i64: 1, 8, 8, 128>}]} {
    %c0 = arith.constant 0 : index
    %c0_0 = arith.constant 0 : index
    %0 = vector.load %arg3[%c0, %c0_0] : memref<1x128xf32, #tpu.memory_space<vmem>>, vector<1x128xf32>
    %1 = vector.shape_cast %0 : vector<1x128xf32> to vector<1x128xf32>
    %2 = vector.broadcast %1 : vector<1x128xf32> to vector<64x128xf32>
    %c0_1 = arith.constant 0 : index
    %c0_2 = arith.constant 0 : index
    %c0_3 = arith.constant 0 : index
    %c0_4 = arith.constant 0 : index
    %3 = vector.load %arg1[%c0_1, %c0_2, %c0_3, %c0_4] : memref<1x9x9x16xf32, #tpu.memory_space<vmem>>, vector<1x8x9x16xf32>
    %4 = vector.shape_cast %3 : vector<1x8x9x16xf32> to vector<8x9x16xf32>
    %5 = vector.extract_strided_slice %4 {offsets = [0, 0, 0], sizes = [8, 8, 16], strides = [1, 1, 1]} : vector<8x9x16xf32> to vector<8x8x16xf32>
    %6 = vector.shape_cast %5 : vector<8x8x16xf32> to vector<64x16xf32>
    %c0_5 = arith.constant 0 : index
    %c0_6 = arith.constant 0 : index
    %c0_7 = arith.constant 0 : index
    %7 = vector.load %arg2[%c0_5, %c0_6, %c0_7] : memref<4x16x128xf32, #tpu.memory_space<vmem>>, vector<1x16x128xf32>
    %8 = vector.shape_cast %7 : vector<1x16x128xf32> to vector<16x128xf32>
    %cst = arith.constant dense<0.000000e+00> : vector<64x128xf32>
    %9 = tpu.matmul %6, %8, %cst {dimension_numbers = #tpu.dot_dimension_numbers<[1], [0], [0], [1], [0, 0, 1, 1], [], []>} : vector<64x16xf32>, vector<16x128xf32>, vector<64x128xf32> -> vector<64x128xf32>
    %10 = arith.addf %2, %9 : vector<64x128xf32>
    %11 = vector.extract_strided_slice %4 {offsets = [0, 1, 0], sizes = [8, 8, 16], strides = [1, 1, 1]} : vector<8x9x16xf32> to vector<8x8x16xf32>
    %12 = vector.shape_cast %11 : vector<8x8x16xf32> to vector<64x16xf32>
    %c1 = arith.constant 1 : index
    %c0_8 = arith.constant 0 : index
    %c0_9 = arith.constant 0 : index
    %13 = vector.load %arg2[%c1, %c0_8, %c0_9] : memref<4x16x128xf32, #tpu.memory_space<vmem>>, vector<1x16x128xf32>
    %14 = vector.shape_cast %13 : vector<1x16x128xf32> to vector<16x128xf32>
    %cst_10 = arith.constant dense<0.000000e+00> : vector<64x128xf32>
    %15 = tpu.matmul %12, %14, %cst_10 {dimension_numbers = #tpu.dot_dimension_numbers<[1], [0], [0], [1], [0, 0, 1, 1], [], []>} : vector<64x16xf32>, vector<16x128xf32>, vector<64x128xf32> -> vector<64x128xf32>
    %16 = arith.addf %10, %15 : vector<64x128xf32>
    %c0_11 = arith.constant 0 : index
    %c1_12 = arith.constant 1 : index
    %c0_13 = arith.constant 0 : index
    %c0_14 = arith.constant 0 : index
    %17 = vector.load %arg1[%c0_11, %c1_12, %c0_13, %c0_14] : memref<1x9x9x16xf32, #tpu.memory_space<vmem>>, vector<1x8x9x16xf32>
    %18 = vector.shape_cast %17 : vector<1x8x9x16xf32> to vector<8x9x16xf32>
    %19 = vector.extract_strided_slice %18 {offsets = [0, 0, 0], sizes = [8, 8, 16], strides = [1, 1, 1]} : vector<8x9x16xf32> to vector<8x8x16xf32>
    %20 = vector.shape_cast %19 : vector<8x8x16xf32> to vector<64x16xf32>
    %c2 = arith.constant 2 : index
    %c0_15 = arith.constant 0 : index
    %c0_16 = arith.constant 0 : index
    %21 = vector.load %arg2[%c2, %c0_15, %c0_16] : memref<4x16x128xf32, #tpu.memory_space<vmem>>, vector<1x16x128xf32>
    %22 = vector.shape_cast %21 : vector<1x16x128xf32> to vector<16x128xf32>
    %cst_17 = arith.constant dense<0.000000e+00> : vector<64x128xf32>
    %23 = tpu.matmul %20, %22, %cst_17 {dimension_numbers = #tpu.dot_dimension_numbers<[1], [0], [0], [1], [0, 0, 1, 1], [], []>} : vector<64x16xf32>, vector<16x128xf32>, vector<64x128xf32> -> vector<64x128xf32>
    %24 = arith.addf %16, %23 : vector<64x128xf32>
    %25 = vector.extract_strided_slice %18 {offsets = [0, 1, 0], sizes = [8, 8, 16], strides = [1, 1, 1]} : vector<8x9x16xf32> to vector<8x8x16xf32>
    %26 = vector.shape_cast %25 : vector<8x8x16xf32> to vector<64x16xf32>
    %c3 = arith.constant 3 : index
    %c0_18 = arith.constant 0 : index
    %c0_19 = arith.constant 0 : index
    %27 = vector.load %arg2[%c3, %c0_18, %c0_19] : memref<4x16x128xf32, #tpu.memory_space<vmem>>, vector<1x16x128xf32>
    %28 = vector.shape_cast %27 : vector<1x16x128xf32> to vector<16x128xf32>
    %cst_20 = arith.constant dense<0.000000e+00> : vector<64x128xf32>
    %29 = tpu.matmul %26, %28, %cst_20 {dimension_numbers = #tpu.dot_dimension_numbers<[1], [0], [0], [1], [0, 0, 1, 1], [], []>} : vector<64x16xf32>, vector<16x128xf32>, vector<64x128xf32> -> vector<64x128xf32>
    %30 = arith.addf %24, %29 : vector<64x128xf32>
    %cst_21 = arith.constant 0.000000e+00 : f32
    %31 = vector.broadcast %cst_21 : f32 to vector<64x128xf32>
    %32 = arith.maximumf %30, %31 : vector<64x128xf32>
    %33 = vector.shape_cast %32 : vector<64x128xf32> to vector<8x8x128xf32>
    %c0_22 = arith.constant 0 : index
    %c0_23 = arith.constant 0 : index
    %c0_24 = arith.constant 0 : index
    %c0_25 = arith.constant 0 : index
    %34 = vector.load %arg4[%c0_22, %c0_23, %c0_24, %c0_25] : memref<1x8x8x128xf32, #tpu.memory_space<vmem>>, vector<1x8x8x128xf32>
    %35 = vector.shape_cast %34 : vector<1x8x8x128xf32> to vector<8x8x128xf32>
    %36 = vector.shape_cast %33 : vector<8x8x128xf32> to vector<1x8x8x128xf32>
    tpu.vector_store %arg4[%c0_22, %c0_23, %c0_24, %c0_25], %36 {strides = array<i32>} : memref<1x8x8x128xf32, #tpu.memory_space<vmem>>, vector<1x8x8x128xf32>,
    return
  }
  func.func @transform_0(%arg0: i32) -> (i32, i32, i32, i32) {
    %c0_i32 = arith.constant 0 : i32
    %c0_i32_0 = arith.constant 0 : i32
    %c0_i32_1 = arith.constant 0 : i32
    %c0_i32_2 = arith.constant 0 : i32
    return %arg0, %c0_i32, %c0_i32_0, %c0_i32_1 : i32, i32, i32, i32
  }
  func.func @transform_1(%arg0: i32) -> (i32, i32, i32) {
    %c0_i32 = arith.constant 0 : i32
    %c0_i32_0 = arith.constant 0 : i32
    %c0_i32_1 = arith.constant 0 : i32
    %c0_i32_2 = arith.constant 0 : i32
    return %c0_i32, %c0_i32_0, %c0_i32_1 : i32, i32, i32
  }
  func.func @transform_2(%arg0: i32) -> (i32, i32) {
    %c0_i32 = arith.constant 0 : i32
    %c0_i32_0 = arith.constant 0 : i32
    %c0_i32_1 = arith.constant 0 : i32
    return %c0_i32, %c0_i32_0 : i32, i32
  }
  func.func @transform_3(%arg0: i32) -> (i32, i32, i32, i32) {
    %c0_i32 = arith.constant 0 : i32
    %c0_i32_0 = arith.constant 0 : i32
    %c0_i32_1 = arith.constant 0 : i32
    %c0_i32_2 = arith.constant 0 : i32
    return %arg0, %c0_i32, %c0_i32_0, %c0_i32_1 : i32, i32, i32, i32
  }
}

</mosaic_0001>

<bundles_post_ra>
// kernel: tpu_custom_call.1
= control target key start
LH: loop header
LB: loop body
LE: loop exit
PB: predicated region body
PF: predicated region fallthrough
CT: control target
= control target key end

     0   :  { %8 = vsyncpa [#allocation3], 0  ;;  %s1826_s0 = inlined_call_operand.hbm [shape: f32[2,9,9,16], index: 0, kind: input, shape index: {}]   ;;  %s1827_s1 = inlined_call_operand.hbm [shape: f32[4,16,128], index: 1, kind: input, shape index: {}]   ;;  %s1828_s2 = inlined_call_operand.hbm [shape: f32[1,128], index: 2, kind: input, shape index: {}]   ;;  %s1829_s3 = inlined_call_operand.hbm [shape: f32[2,8,8,128], index: 3, kind: output, shape index: {}]  }
   0x1   :  { %10 = vsyncpa [#allocation3 + $0x1], 0 }
   0x2   :  { %11 = vsyncpa [#allocation6], 0 }
   0x3   :  { %12 = vsyncpa [#allocation4], 0 }
   0x4   :  { %14 = vsyncpa [#allocation4 + $0x1], 0  ;;  %s1464_s12 = smov 0   ;;  %s1466_s13 = smov 0  }
   0x5   :  { %s1468_s14 = smov 0   ;;  %s1470_s15 = smov 0  }
   0x6 LB: > { %s1485_s16 = sadd.s32 4294967295, %s1434_s15   ;;  %s987_s17 = sadd.s32 4294967294, %s1434_s15   ;;  %s1434_s15 = sphi %s1470_s15, %s1849_s15   ;;  %s1430_s14 = sphi %s1468_s14, %s1848_s14   ;;  %s1426_s13 = sphi %s1466_s13, %s1847_s13   ;;  %s1422_s12 = sphi %s1464_s12, %s1846_s12  }
   0x7   : > { %p40_p0 = scmp.ne.s32.totalorder %s1426_s13, %s1422_s12  ;;  %p1830_p1 = scmp.eq.s32.totalorder %s1485_s16, 0 }
   0x8   : > { %p112_p3 = scmp.eq.s32.totalorder %s987_s17, 1  ;;  %p988_p5 = scmp.ge.s32.totalorder %s1434_s15, 1 }
   0x9   : > { %p1494_p4 = por %p1830_p1, %p40_p0  ;;  %p119_p7 = scmp.lt.s32.totalorder %s1434_s15, 3 }
   0xa   : > { %p1499_p6 = por %p112_p3, %p40_p0  ;;  %s1436_s21 = smov [#allocation5]  }
   0xb   : > { %s1833_s18 = scalar_select %p1494_p4, 1, 0 }
   0xc   : > { %s1834_s19 = scalar_select %p1499_p6, 1, 0 }
   0xd   : > { %p1504_p8 = pnand %p988_p5, %p119_p7  ;;  %s131_s22 = sshll.u32 %s1436_s21, 4  ;;  %s1508_s22 = int_to_ptr.vmem [resolvable:$true] %s131_s22 }
   0xe   : > { %s1437_s24 = smov [#allocation7]   ;;  %s1278_s28 = scalar_lea.hbm %s1827_s1, 1024 }
   0xf   : > { %p1219_p9 = pneg %p1504_p8  ;;  %s145_s25 = sshll.u32 %s1437_s24, 4  ;;  %s1519_s25 = int_to_ptr.vmem [resolvable:$true] %s145_s25 }
  0x10   : > { %p1279_p12 = scmp.ne.s32.totalorder %s1827_s1, %s1278_s28  ;;  %p1285_p5 = scmp.lt.u32.totalorder %s1278_s28, %s1827_s1 }
  0x11   : > { %p1515_p11 = pnand %p1219_p9, %p1830_p1 }
  0x13   : > { %p1280_p13 = pneg %p1515_p11 }
  0x15   : > { %p1281_p0 = pnand %p1280_p13, %p1279_p12 }
  0x17   : > { %p1282_p3 = pneg %p1281_p0 }
  0x19   : > { %p1287_p7 = pnand %p1285_p5, %p1282_p3 }
  0x1b   : > { %1290 = shalt.err (!%p1287_p7)
}
  0x1c   : > { %s1291_s6 = scalar_lea.vmem %s1508_s22, 1024  ;;  %p1299_p2 = scmp.lt.s32.totalorder %s1508_s22, %s1508_s22 }
  0x1d   : > { %p1292_p9 = scmp.ne.s32.totalorder %s1508_s22, %s1291_s6  ;;  %p1300_p12 = scmp.lt.s32.totalorder %s1291_s6, %s1291_s6 }
  0x1f   : > { %p1294_p10 = pnand %p1292_p9, %p1280_p13  ;;  %p1301_p0 = por %p1300_p12, %p1299_p2 }
  0x21   : > { %p1295_p1 = pneg %p1294_p10 }
  0x23   : > { %p1302_p6 = pnand %p1301_p0, %p1295_p1 }
  0x25   : > { %1305 = shalt.err (!%p1302_p6)
}
  0x26   : > { %s1438_s7 = smov 128   ;;  %s1439_s8 = smov 8  }
  0x27   : > { %1222 = dma.hbm_to_vmem [thread:$0]  (!%p1515_p11), %s1827_s1, 1024, %s1508_s22, [#allocation6], %s1438_s7, %s1438_s7, %s1439_s8  }
  0x28   : > { %s1306_s21 = scalar_lea.hbm %s1828_s2, 16 }
  0x29   : > { %p1307_p1 = scmp.ne.s32.totalorder %s1828_s2, %s1306_s21  ;;  %p1313_p10 = scmp.lt.u32.totalorder %s1306_s21, %s1828_s2 }
  0x2b   : > { %p1309_p2 = pnand %p1307_p1, %p1280_p13 }
  0x2d   : > { %p1310_p6 = pneg %p1309_p2 }
  0x2f   : > { %p1315_p3 = pnand %p1313_p10, %p1310_p6 }
  0x31   : > { %1318 = shalt.err (!%p1315_p3)
}
  0x32   : > { %s1319_s22 = scalar_lea.vmem %s1519_s25, 16  ;;  %s1326_s29 = scalar_lea.vmem %s1519_s25, 32 }
  0x33   : > { %p1320_p5 = scmp.ne.s32.totalorder %s1519_s25, %s1319_s22  ;;  %p1327_p12 = scmp.lt.s32.totalorder %s1519_s25, %s1519_s25 }
  0x34   : > { %p1328_p0 = scmp.lt.s32.totalorder %s1326_s29, %s1319_s22 }
  0x35   : > { %p1322_p7 = pnand %p1320_p5, %p1280_p13 }
  0x36   : > { %p1329_p1 = por %p1328_p0, %p1327_p12 }
  0x37   : > { %p1323_p9 = pneg %p1322_p7 }
  0x39   : > { %p1330_p2 = pnand %p1329_p1, %p1323_p9 }
  0x3b   : > { %1333 = shalt.err (!%p1330_p2)
}
  0x3c   : > { %1225 = dma.hbm_to_vmem [thread:$0]  (!%p1515_p11), %s1828_s2, 16, %s1519_s25, [#allocation6]  }
  0x3d   : > { %s1578_s5 = sadd.s32 1, %s1434_s15   ;;  %s27_s23 = sadd.s32 1, %s1430_s14 }
  0x3e   : > { %s24_s6 = ssub.s32 %s1434_s15, %s1578_s5  ;;  %p34_p13 = scmp.ne.s32.totalorder %s1430_s14, %s1426_s13 }
  0x3f   : > { %p25_p6 = scmp.eq.s32.totalorder %s24_s6, 0  ;;  %p35_p10 = scmp.eq.s32.totalorder %s1434_s15, 0 }
  0x40   : > { %p1837_p3 = scmp.eq.s32.totalorder %s1485_s16, 1  ;;  %p1236_p7 = scmp.lt.s32.totalorder %s1434_s15, 2 }
  0x41   : > { %s1594_s10 = scalar_select %p25_p6, %s1430_s14, %s27_s23  }
  0x42   : > { %p1588_p5 = por %p1837_p3, %p34_p13  ;;  %p36_p9 = por %p35_p10, %p34_p13 }
  0x43   : > { %s156_s11 = sand.u32 1, %s1430_s14   ;;  %s1205_s25 = smul.u32 2304, %s1434_s15 }
  0x44   : > { %s1838_s9 = scalar_select %p1588_p5, 1, 0 }
  0x45   : > { %s1204_s17 = smul.u32 144, %s156_s11  ;;  %p1598_p11 = pnand %p1236_p7, %p36_p9 }
  0x46   : > { %s1605_s27 = scalar_lea.hbm %s1826_s0, %s1205_s25  ;;  %s1609_s29 = scalar_lea.sflag [#allocation3], %s156_s11 }
  0x47   : > { %s160_s28 = scalar_lea.vmem [#allocation2], %s1204_s17  ;;  %s1334_s30 = scalar_lea.hbm %s1605_s27, 2304 }
  0x48   : > { %s167_s22 = sshll.u32 %s160_s28, 4  ;;  %p1335_p12 = scmp.ne.s32.totalorder %s1605_s27, %s1334_s30  ;;  %s1607_s22 = int_to_ptr.vmem [resolvable:$true] %s167_s22 }
  0x49   : > { %p1336_p0 = pneg %p1598_p11  ;;  %s1339_s6 = scalar_lea.hbm %s1826_s0, 4608 }
  0x4a   : > { %p1340_p13 = scmp.lt.u32.totalorder %s1605_s27, %s1826_s0  ;;  %p1341_p6 = scmp.lt.u32.totalorder %s1339_s6, %s1334_s30 }
  0x4b   : > { %p1337_p1 = pnand %p1336_p0, %p1335_p12  ;;  %p1343_p3 = scmp.lt.u32.totalorder %s1334_s30, %s1605_s27 }
  0x4c   : > { %p1342_p10 = por %p1341_p6, %p1340_p13 }
  0x4d   : > { %p1338_p2 = pneg %p1337_p1 }
  0x4e   : > { %p1344_p7 = por %p1343_p3, %p1342_p10 }
  0x50   : > { %p1345_p9 = pnand %p1344_p7, %p1338_p2 }
  0x52   : > { %1348 = shalt.err (!%p1345_p9)
}
  0x53   : > { %s1349_s11 = scalar_lea.vmem %s1607_s22, 2304  ;;  %s1440_s17 = smov [#allocation2]  }
  0x54   : > { %p1350_p12 = scmp.ne.s32.totalorder %s1607_s22, %s1349_s11  ;;  %s1354_s26 = sshll.u32 %s1440_s17, 4  ;;  %s1355_s26 = int_to_ptr.vmem [resolvable:$false] %s1354_s26 }
  0x55   : > { %s1356_s28 = scalar_lea.vmem %s1355_s26, 4608  ;;  %p1357_p4 = scmp.lt.s32.totalorder %s1607_s22, %s1355_s26 }
  0x56   : > { %p1352_p1 = pnand %p1350_p12, %p1336_p0  ;;  %p1358_p13 = scmp.lt.s32.totalorder %s1356_s28, %s1349_s11 }
  0x58   : > { %p1353_p5 = pneg %p1352_p1  ;;  %p1359_p6 = por %p1358_p13, %p1357_p4 }
  0x5a   : > { %p1360_p10 = pnand %p1359_p6, %p1353_p5 }
  0x5c   : > { %1363 = shalt.err (!%p1360_p10)
}
  0x5d   : > { %1229 = dma.hbm_to_vmem [thread:$0]  (!%p1598_p11), %s1605_s27, 2304, %s1607_s22, %s1609_s29, %s1438_s7, %s1438_s7, %s1439_s8  }
  0x5e   : > { %179 = sbr.rel (%p1504_p8) target bundleno = 375 (0x177), region = 32  ;;  %s1643_s30 = sand.u32 (!%p1504_p8), 1, %s1426_s13  }
  0x5f   : > { %s1206_s4 = smul.u32 (!%p1504_p8), 144, %s1643_s30  ;;  %s182_s23 = scalar_lea.sflag (!%p1504_p8), [#allocation3], %s1643_s30 }
  0x60   : > { %p1840_p4 = scmp.ne.s32.totalorder (!%p1504_p8), %s1833_s18, 0 }
  0x61   : > { %s1647_s6 = scalar_lea.vmem (!%p1504_p8), [#allocation2], %s1206_s4 }
  0x65   : > { %1409 = dma.done.wait (%p1840_p4), %s182_s23, 2304  }
  0x66   : > { %1411 = vsyncadd (%p1840_p4), %s182_s23, 4294964992  ;;  %p1841_p5 = scmp.eq.s32.totalorder %s1485_s16, 0 }
  0x68   : > { %1413 = dma.done.wait (%p1841_p5), [#allocation6], 1040   ;;  %p1842_p8 = pmov %p1841_p5 }
  0x69   : > { %vm241_vm0 = vcmask 130048   ;;  %v239_v0 = vld [vmem:[#allocation5] sm:$0xff]  ;;  %v240_v1 = vld [vmem:[#allocation5 + $0x8] sm:$0xff]  ;;  %v413_v8 = vld [vmem:[#allocation5 + $0x10] sm:$0xff]  ;;  %vm387_vm1 = vcmask 1046528   ;;  %s996_s18 = sshll.u32 %s1643_s30, 6 }
  0x6a   : > { %1415 = vsyncadd (%p1842_p8), [#allocation6], 4294966256  ;;  %v562_v2 = vld [vmem:[#allocation5 + $0x20] sm:$0xff]  ;;  %v1156_v3 = vpack.c.bf16 %v240_v1, %v239_v0  ;;  %v563_v4 = vld [vmem:[#allocation5 + $0x28] sm:$0xff]  ;;  %s1765_s20 = scalar_lea.vmem [#allocation8], %s996_s18  ;;  %s1051_s8 = sshll.u32 %s1485_s16, 10 }
  0x6b   : > { %v223_v5 = vld [vmem:[%s1647_s6] sm:$0xff]  ;;  %v1659_v6 = vld [vmem:[%s1647_s6 + $0x10] sm:$0xff]  ;;  %v1164_v7 = vpack.c.bf16 %v563_v4, %v562_v2  ;;  %v414_v9 = vld [vmem:[#allocation5 + $0x18] sm:$0xff]  ;;  %s895_s7 = sshll.u32 %s1765_s20, 4  ;;  %s1780_s22 = scalar_lea.hbm %s1829_s3, %s1051_s8  ;;  %s1774_s7 = int_to_ptr.vmem [resolvable:$true] %s895_s7 }
  0x6c   : > { %1096 = vmatprep.mubr.msk.f32.mxu1 %vm241_vm0, %v223_v5  ;;  %1128 = vmatprep.mubr.msk.f32.mxu0 %vm241_vm0, %v1659_v6  ;;  %v1160_v10 = vpack.c.bf16 %v414_v9, %v413_v8  ;;  %v734_v11 = vld [vmem:[#allocation5 + $0x30] sm:$0xff]  ;;  %v735_v12 = vld [vmem:[#allocation5 + $0x38] sm:$0xff]  ;;  %v388_v20 = vrot.slane %v223_v5, 1  ;;  %v709_v21 = vrot.slane %v1659_v6, 1  ;;  %s882_s29 = scalar_lea.sflag [#allocation4], %s1643_s30  ;;  %s1364_s16 = scalar_lea.vmem %s1774_s7, 1024 }
  0x6d   : > { %1157 = vmatprep.subr.bf16.mxu1 %v1156_v3  ;;  %1165 = vmatprep.subr.bf16.mxu0 %v1164_v7  ;;  %v1168_v13 = vpack.c.bf16 %v735_v12, %v734_v11  ;;  %v1016_v14 = vld [vmem:[%s1647_s6 + $0x20] sm:$0xff]  ;;  %v1666_v15 = vld [vmem:[%s1647_s6 + $0x30] sm:$0xff]  ;;  %v224_v18 = vld [vmem:[%s1647_s6 + $0x8] sm:$0x1]  ;;  %p1365_p11 = scmp.ne.s32.totalorder %s1774_s7, %s1364_s16  ;;  %p1843_p0 = scmp.ne.s32.totalorder %s1838_s9, 0 }
  0x6e   : > { %1159 = vmatpush3.bf16.msra.mxu1 %v1156_v3  ;;  %1167 = vmatpush3.bf16.msra.mxu0 %v1164_v7  ;;  %v1675_v16 = vld [vmem:[%s1647_s6 + $0x40] sm:$0xff]  ;;  %v1678_v17 = vld [vmem:[%s1647_s6 + $0x50] sm:$0xff]  ;;  %v1015_v19 = vld [vmem:[%s1647_s6 + $0x18] sm:$0x1]  ;;  %v389_v23 = vrot.slane %v224_v18, 1  ;;  %v712_v31 = vrot.slane %v1016_v14, 1 }
  0x6f   : > { %1161 = vmatprep.subr.bf16.mxu1 %v1160_v10  ;;  %1169 = vmatprep.subr.bf16.mxu0 %v1168_v13  ;;  %v1692_v22 = vld [vmem:[%s1647_s6 + $0x60] sm:$0xff]  ;;  %v226_v24 = vld [vmem:[%s1647_s6 + $0x18] sm:$0x1]  ;;  %v1696_v25 = vld [vmem:[%s1647_s6 + $0x70] sm:$0xff]  ;;  %v710_v26 = vrot.slane %v1015_v19, 1  ;;  %v715_v37 = vrot.slane %v1666_v15, 1  ;;  %p1366_p2 = pnand %p1365_p11, %p1843_p0 }
  0x70   : > { %v1017_v27 = vld [vmem:[%s1647_s6 + $0x28] sm:$0x1]  ;;  %v1019_v29 = vld [vmem:[%s1647_s6 + $0x38] sm:$0x1]  ;;  %v392_v30 = vrot.slane %v226_v24, 1  ;;  %v1710_v32 = vld [vmem:[%s1647_s6 + $0x80] sm:$0xff]  ;;  %v390_v33 = vsel %vm387_vm1, %v388_v20, %v389_v23 }
  0x71   : > { %1097 = vmatmul.mubr.msk.f32.vlgmr.msra.gmra.mrb[0].mxu1 %vm241_vm0, %v1659_v6  ;;  %1129 = vmatmul.mubr.msk.f32.vlgmr.msra.gmra.mrb[0].mxu0 %vm241_vm0, %v1016_v14  ;;  %v228_v28 = vld [vmem:[%s1647_s6 + $0x28] sm:$0x1]  ;;  %v713_v34 = vrot.slane %v1017_v27, 1  ;;  %v230_v36 = vld [vmem:[%s1647_s6 + $0x38] sm:$0x1]  ;;  %v711_v38 = vsel %vm387_vm1, %v709_v21, %v710_v26  ;;  %v716_v39 = vrot.slane %v1019_v29, 1  ;;  %p1367_p3 = pneg %p1366_p2 }
  0x72   : > { %1163 = vmatpush3.bf16.msra.mxu1 %v1160_v10  ;;  %1099 = vmatprep.mubr.msk.f32.mxu1 %vm241_vm0, %v1016_v14  ;;  %v395_v35 = vrot.slane %v228_v28, 1  ;;  %v1021_v40 = vld [vmem:[%s1647_s6 + $0x48] sm:$0x1]  ;;  %v1023_v42 = vld [vmem:[%s1647_s6 + $0x58] sm:$0x1]  ;;  %v718_v43 = vrot.slane %v1675_v16, 1  ;;  %v393_v44 = vsel %vm387_vm1, %v709_v21, %v392_v30 }
  0x73   : > { %1131 = vmatprep.mubr.msk.f32.mxu0 %vm241_vm0, %v1666_v15  ;;  %1171 = vmatpush3.bf16.msra.mxu0 %v1168_v13  ;;  %v232_v41 = vld [vmem:[%s1647_s6 + $0x48] sm:$0x1]  ;;  %v398_v45 = vrot.slane %v230_v36, 1  ;;  %v714_v46 = vsel %vm387_vm1, %v712_v31, %v713_v34  ;;  %v719_v48 = vrot.slane %v1021_v40, 1  ;;  %v234_v50 = vld [vmem:[%s1647_s6 + $0x58] sm:$0x1]  ;;  %v717_v52 = vsel %vm387_vm1, %v715_v37, %v716_v39 }
  0x74   : > { %v396_v47 = vsel %vm387_vm1, %v712_v31, %v395_v35  ;;  %v401_v49 = vrot.slane %v232_v41, 1  ;;  %v721_v51 = vrot.slane %v1678_v17, 1  ;;  %v722_v53 = vrot.slane %v1023_v42, 1  ;;  %v1025_v54 = vld [vmem:[%s1647_s6 + $0x68] sm:$0x1]  ;;  %s1441_s25 = smov [#allocation8]  }
  0x75   : > { %1100 = vmatmul.mubr.msk.f32.gmra.mrb[2].mxu1 %vm241_vm0, %v1666_v15  ;;  %1132 = vmatmul.mubr.msk.f32.gmra.mrb[2].mxu0 %vm241_vm0, %v1675_v16  ;;  %v236_v55 = vld [vmem:[%s1647_s6 + $0x68] sm:$0x1]  ;;  %v1027_v56 = vld [vmem:[%s1647_s6 + $0x78] sm:$0x1]  ;;  %v724_v57 = vrot.slane %v1692_v22, 1  ;;  %v399_v58 = vsel %vm387_vm1, %v715_v37, %v398_v45  ;;  %v404_v59 = vrot.slane %v234_v50, 1  ;;  %v720_v60 = vsel %vm387_vm1, %v718_v43, %v719_v48 }
  0x76   : > { %1102 = vmatprep.mubr.msk.f32.mxu1 %vm241_vm0, %v1675_v16  ;;  %1134 = vmatprep.mubr.msk.f32.mxu0 %vm241_vm0, %v1678_v17  ;;  %v402_v61 = vsel %vm387_vm1, %v718_v43, %v401_v49  ;;  %v725_v62 = vrot.slane %v1025_v54, 1  ;;  %v407_v63 = vrot.slane %v236_v55, 1  ;;  %v238_v0 = vld [vmem:[%s1647_s6 + $0x78] sm:$0x1]  ;;  %v727_v1 = vrot.slane %v1696_v25, 1  ;;  %s1368_s24 = sshll.u32 %s1441_s25, 4  ;;  %s1369_s24 = int_to_ptr.vmem [resolvable:$false] %s1368_s24 }
  0x77   : > { %v723_v2 = vsel %vm387_vm1, %v721_v51, %v722_v53  ;;  %v728_v3 = vrot.slane %v1027_v56, 1  ;;  %v1029_v4 = vld [vmem:[%s1647_s6 + $0x88] sm:$0x1]  ;;  %v405_v5 = vsel %vm387_vm1, %v721_v51, %v404_v59  ;;  %v410_v6 = vrot.slane %v238_v0, 1  ;;  %v997_v14 = vld [vmem:[#allocation7] ss:$0 sm:$0xff]  ;;  %p1371_p7 = scmp.lt.s32.totalorder %s1774_s7, %s1369_s24 }
  0x78   : > { %v730_v7 = vrot.slane %v1710_v32, 1  ;;  %v726_v8 = vsel %vm387_vm1, %v724_v57, %v725_v62  ;;  %v408_v9 = vsel %vm387_vm1, %v724_v57, %v407_v63  ;;  %v731_v10 = vrot.slane %v1029_v4, 1  ;;  %s1370_s11 = scalar_lea.vmem %s1369_s24, 2048 }
  0x79   : > { %1103 = vmatmul.mubr.msk.f32.gmra.mrb[4].mxu1 %vm241_vm0, %v1678_v17  ;;  %1135 = vmatmul.mubr.msk.f32.gmra.mrb[4].mxu0 %vm241_vm0, %v1692_v22  ;;  %v729_v11 = vsel %vm387_vm1, %v727_v1, %v728_v3  ;;  %v411_v12 = vsel %vm387_vm1, %v727_v1, %v410_v6  ;;  %p1372_p9 = scmp.lt.s32.totalorder %s1370_s11, %s1364_s16 }
  0x7a   : > { %1105 = vmatprep.mubr.msk.f32.mxu1 %vm241_vm0, %v1692_v22  ;;  %1137 = vmatprep.mubr.msk.f32.mxu0 %vm241_vm0, %v1696_v25  ;;  %v732_v13 = vsel %vm387_vm1, %v730_v7, %v731_v10 }
  0x7b   : > { %p1373_p12 = por %p1372_p9, %p1371_p7 }
  0x7d   : > { %1106 = vmatmul.mubr.msk.f32.gmra.mrb[6].mxu1 %vm241_vm0, %v1696_v25  ;;  %1138 = vmatmul.mubr.msk.f32.gmra.mrb[6].mxu0 %vm241_vm0, %v1710_v32  ;;  %p1374_p1 = pnand %p1373_p12, %p1367_p3 }
  0x7e   : > { %1112 = vmatprep.mubr.msk.f32.mxu1 %vm241_vm0, %v390_v33  ;;  %1144 = vmatprep.mubr.msk.f32.mxu0 %vm241_vm0, %v711_v38 }
  0x81   : > { %1113 = vmatmul.mubr.msk.f32.vlgmr.msra.gmra.mrb[0].mxu1 %vm241_vm0, %v393_v44  ;;  %1145 = vmatmul.mubr.msk.f32.vlgmr.msra.gmra.mrb[0].mxu0 %vm241_vm0, %v714_v46 }
  0x82   : > { %1115 = vmatprep.mubr.msk.f32.mxu1 %vm241_vm0, %v396_v47  ;;  %1147 = vmatprep.mubr.msk.f32.mxu0 %vm241_vm0, %v717_v52 }
  0x85   : > { %1116 = vmatmul.mubr.msk.f32.gmra.mrb[2].mxu1 %vm241_vm0, %v399_v58  ;;  %1148 = vmatmul.mubr.msk.f32.gmra.mrb[2].mxu0 %vm241_vm0, %v720_v60 }
  0x86   : > { %1118 = vmatprep.mubr.msk.f32.mxu1 %vm241_vm0, %v402_v61  ;;  %1150 = vmatprep.mubr.msk.f32.mxu0 %vm241_vm0, %v723_v2 }
  0x89   : > { %1119 = vmatmul.mubr.msk.f32.gmra.mrb[4].mxu1 %vm241_vm0, %v405_v5  ;;  %1151 = vmatmul.mubr.msk.f32.gmra.mrb[4].mxu0 %vm241_vm0, %v726_v8 }
  0x8a   : > { %1121 = vmatprep.mubr.msk.f32.mxu1 %vm241_vm0, %v408_v9  ;;  %1153 = vmatprep.mubr.msk.f32.mxu0 %vm241_vm0, %v729_v11 }
  0x8d   : > { %1122 = vmatmul.mubr.msk.f32.gmra.mrb[6].mxu1 %vm241_vm0, %v411_v12  ;;  %1154 = vmatmul.mubr.msk.f32.gmra.mrb[6].mxu0 %vm241_vm0, %v732_v13 }
 0x154   : > { %v1114_v15 = vpop.f32.mrb[0].mxu1  ;;  %v1146_v17 = vpop.f32.mrb[0].mxu0 }
 0x155   : > { %v1172_v16 = vadd.f32 %v1114_v15, %v997_v14  ;;  %v497_v18 = vpop.f32.mrb[1].mxu1  ;;  %v818_v20 = vpop.f32.mrb[1].mxu0 }
 0x156   : > { %v1174_v19 = vadd.f32 %v997_v14, %v497_v18 }
 0x157   : > { %v1173_v21 = vadd.f32 %v1172_v16, %v1146_v17 }
 0x158   : > { %v1175_v22 = vadd.f32 %v1174_v19, %v818_v20  ;;  %v1117_v23 = vpop.f32.mrb[2].mxu1  ;;  %v1149_v26 = vpop.f32.mrb[2].mxu0 }
 0x159   : > { %v866_v24 = vmax.f32 %v1173_v21, 0.0  ;;  %v1176_v25 = vadd.f32 %v1117_v23, %v997_v14  ;;  %v507_v27 = vpop.f32.mrb[3].mxu1  ;;  %v828_v30 = vpop.f32.mrb[3].mxu0 }
 0x15a   : > { %v865_v28 = vmax.f32 %v1175_v22, 0.0  ;;  %v1178_v29 = vadd.f32 %v997_v14, %v507_v27 }
 0x15b   : > { %874 = vst [vmem:[%s1765_s20 + $0x8] sm:$0xff] %v866_v24  ;;  %v1177_v31 = vadd.f32 %v1176_v25, %v1149_v26 }
 0x15c   : > { %873 = vst [vmem:[%s1765_s20] sm:$0xff] %v865_v28  ;;  %v1179_v32 = vadd.f32 %v1178_v29, %v828_v30  ;;  %v1120_v33 = vpop.f32.mrb[4].mxu1  ;;  %v1152_v36 = vpop.f32.mrb[4].mxu0 }
 0x15d   : > { %v868_v34 = vmax.f32 %v1177_v31, 0.0  ;;  %v1180_v35 = vadd.f32 %v1120_v33, %v997_v14  ;;  %v517_v37 = vpop.f32.mrb[5].mxu1  ;;  %v838_v40 = vpop.f32.mrb[5].mxu0 }
 0x15e   : > { %v867_v38 = vmax.f32 %v1179_v32, 0.0  ;;  %v1182_v39 = vadd.f32 %v997_v14, %v517_v37 }
 0x15f   : > { %876 = vst [vmem:[%s1765_s20 + $0x18] sm:$0xff] %v868_v34  ;;  %v1181_v41 = vadd.f32 %v1180_v35, %v1152_v36 }
 0x160   : > { %875 = vst [vmem:[%s1765_s20 + $0x10] sm:$0xff] %v867_v38  ;;  %v1183_v42 = vadd.f32 %v1182_v39, %v838_v40  ;;  %v1123_v43 = vpop.f32.mrb[6].mxu1  ;;  %v1155_v46 = vpop.f32.mrb[6].mxu0 }
 0x161   : > { %v870_v44 = vmax.f32 %v1181_v41, 0.0  ;;  %v1184_v45 = vadd.f32 %v1123_v43, %v997_v14  ;;  %v527_v47 = vpop.f32.mrb[7].mxu1  ;;  %v848_v50 = vpop.f32.mrb[7].mxu0 }
 0x162   : > { %v869_v48 = vmax.f32 %v1183_v42, 0.0  ;;  %v1186_v49 = vadd.f32 %v997_v14, %v527_v47 }
 0x163   : > { %878 = vst [vmem:[%s1765_s20 + $0x28] sm:$0xff] %v870_v44  ;;  %v1185_v51 = vadd.f32 %v1184_v45, %v1155_v46 }
 0x164   : > { %877 = vst [vmem:[%s1765_s20 + $0x20] sm:$0xff] %v869_v48  ;;  %v1187_v52 = vadd.f32 %v1186_v49, %v848_v50 }
 0x165   : > { %v872_v53 = vmax.f32 %v1185_v51, 0.0 }
 0x166   : > { %v871_v54 = vmax.f32 %v1187_v52, 0.0 }
 0x167   : > { %880 = vst [vmem:[%s1765_s20 + $0x38] sm:$0xff] %v872_v53 }
 0x168   : > { %879 = vst [vmem:[%s1765_s20 + $0x30] sm:$0xff] %v871_v54 }
 0x169   : > { %1377 = shalt.err (!%p1374_p1)
}
 0x16a   : > { %s1378_s17 = scalar_lea.hbm %s1780_s22, 1024  ;;  %s1382_s4 = scalar_lea.hbm %s1829_s3, 2048 }
 0x16b   : > { %p1379_p13 = scmp.ne.s32.totalorder %s1780_s22, %s1378_s17  ;;  %p1383_p4 = scmp.lt.u32.totalorder %s1780_s22, %s1829_s3 }
 0x16c   : > { %p1384_p5 = scmp.lt.u32.totalorder %s1382_s4, %s1378_s17  ;;  %p1386_p11 = scmp.lt.u32.totalorder %s1378_s17, %s1780_s22 }
 0x16d   : > { %p1380_p6 = pnand %p1379_p13, %p1843_p0 }
 0x16e   : > { %p1385_p8 = por %p1384_p5, %p1383_p4 }
 0x16f   : > { %p1381_p10 = pneg %p1380_p6 }
 0x170   : > { %p1387_p2 = por %p1386_p11, %p1385_p8 }
 0x172   : > { %p1388_p3 = pnand %p1387_p2, %p1381_p10 }
 0x174   : > { %1391 = shalt.err (!%p1388_p3)
}
 0x175   : > { %s1442_s18 = smov 128   ;;  %s1443_s20 = smov 8  }
 0x176   : > { %1217 = dma.vmem_to_hbm [thread:$0]  (%p1843_p0), %s1774_s7, 1024, %s1780_s22, %s882_s29, %s1442_s18, %s1442_s18, %s1443_s20  }
 0x177 PF: > { %s910_s8 = sand.u32 1, %s1422_s12   ;;  %p1844_p7 = scmp.ne.s32.totalorder %s1834_s19, 0 }
 0x178   : > { %p1845_p9 = scmp.ge.s32.totalorder %s1434_s15, 2  ;;  %s911_s21 = scalar_lea.sflag [#allocation4], %s910_s8 }
 0x17a   : > { %p1231_p12 = pnand %p1845_p9, %p1844_p7 }
 0x17c   : > { %1417 = dma.done.wait (!%p1231_p12), %s911_s21, 1024  }
 0x17d   : > { %1419 = vsyncadd (!%p1231_p12), %s911_s21, 4294966272  ;;  %p17_p1 = scmp.ge.s32.totalorder %s1578_s5, 4   ;;  %s1846_s12 = smov %s1426_s13 }
 0x17e   : > { %s1847_s13 = smov %s1430_s14  ;;  %s1848_s14 = smov %s1594_s10 }
 0x17f   : > { %s1849_s15 = smov %s1578_s5  ;;  %19 = sbr.rel (!%p17_p1) target bundleno = 6 (0x6), region = 89 }
 0x186   :  { %916 = vsyncpa [#allocation3], 1 }
 0x187   :  { %918 = vsyncpa [#allocation3 + $0x1], 1 }
 0x188   :  { %919 = vsyncpa [#allocation6], 1 }
 0x189   :  { %920 = vsyncpa [#allocation4], 1 }
 0x18a   :  { %922 = vsyncpa [#allocation4 + $0x1], 1 }

</bundles_post_ra>
